<compile_context>
chip_gen: v6e
topology: v6e:2x2x1
jax: 0.10.0
libtpu: 0.0.40
codegen_flags: <defaults>
</compile_context>

<pallas_src>
import math

import jax
import jax.numpy as jnp
from jax.experimental import pallas as pl
from jax.experimental.pallas import tpu as pltpu

EPS = 1e-5


def _round_up(v, m):
    return -(-v // m) * m


def _vmem_capacity_bytes():
    """Physical VMEM per TensorCore (128 MiB on v5e/v6e, 64 MiB on v7x)."""
    try:
        cap = getattr(pltpu.get_tpu_info(), "vmem_capacity_bytes", None)
        if cap:
            return int(cap)
    except Exception:
        pass
    return 64 << 20          # conservative (v7x-sized) fallback


# ---------------------------------------------------------------------------
# Kernel
# ---------------------------------------------------------------------------
def _make_kernel(stride, has_proj, use_scratch, cin_p, cout_p, cdt):
    """Residual block on a channels-major (C, tb*lseg) lane-flattened slab."""

    def kernel(*refs):
        it = iter(refs)
        xc_ref = next(it)                                   # centre tap x[s*j]
        xl_ref = next(it) if stride != 1 else None          # x[s*j + s - 1]
        xr_ref = next(it) if stride != 1 else None          # x[s*j + 1]
        mp_ref, mn_ref = next(it), next(it)                 # halo masks (1, tbl)
        w1_ref, b1_ref, w2_ref, b2_ref = next(it), next(it), next(it), next(it)
        ws_ref = next(it) if (has_proj and not use_scratch) else None
        o_ref = next(it)
        rhs1_ref = next(it) if use_scratch else None
        rhs2_ref = next(it) if use_scratch else None

        tbl = xc_ref.shape[1]
        m_prev = mp_ref[...]          # 0.0 at segment-start lanes, else 1.0
        m_next = mn_ref[...]          # 0.0 at last-valid lanes,    else 1.0

        def mm(w, v):                 # bf16/f32 operands, f32 accumulation
            return jnp.dot(w, v.astype(cdt), preferred_element_type=jnp.float32)

        # ---- conv1 taps (k=3; stride folded away host-side) ------------------
        xc = xc_ref[...]
        if stride == 1:
            left = m_prev * pltpu.roll(xc, 1, 1)            # x[j-1] (XLU rotate)
            right = m_next * pltpu.roll(xc, tbl - 1, 1)     # x[j+1]
        else:
            left = m_prev * pltpu.roll(xl_ref[...], 1, 1)   # x[s*j-1]
            right = xr_ref[...]                             # x[s*j+1] (0-padded)

        # ---- conv1 + BN1 + ReLU -----------------------------------------------
        if use_scratch:
            # Fused taps: one deep MXU contraction over a (3*cin_p, tbl) RHS.
            rhs1_ref[0:cin_p, :] = left.astype(cdt)
            rhs1_ref[cin_p:2 * cin_p, :] = xc.astype(cdt)
            rhs1_ref[2 * cin_p:3 * cin_p, :] = right.astype(cdt)
            h = jnp.dot(w1_ref[...], rhs1_ref[...],
                        preferred_element_type=jnp.float32)
        else:
            # Per-tap accumulation: skips the RHS store/reload round-trip
            # (vst-slot bound on v5e / small C; MRB accumulates in place on v7x).
            h = mm(w1_ref[0], left) + mm(w1_ref[1], xc) + mm(w1_ref[2], right)
        h = jnp.maximum(h + b1_ref[...], 0.0)               # BN1 folded into w1/b1

        # ---- conv2 + BN2 (+ fused 1x1 projection shortcut) ---------------------
        h_prev = m_prev * pltpu.roll(h, 1, 1)
        h_next = m_next * pltpu.roll(h, tbl - 1, 1)
        if use_scratch:
            rhs2_ref[0:cout_p, :] = h_prev.astype(cdt)
            rhs2_ref[cout_p:2 * cout_p, :] = h.astype(cdt)
            rhs2_ref[2 * cout_p:3 * cout_p, :] = h_next.astype(cdt)
            if has_proj:                                    # ws concatenated into w2
                rhs2_ref[3 * cout_p:3 * cout_p + cin_p, :] = xc.astype(cdt)
            y = jnp.dot(w2_ref[...], rhs2_ref[...],
                        preferred_element_type=jnp.float32)
        else:
            y = mm(w2_ref[0], h_prev) + mm(w2_ref[1], h) + mm(w2_ref[2], h_next)
            if has_proj:
                y = y + mm(ws_ref[...], xc)
        y = y + b2_ref[...]                                 # BN2 (+ shortcut BN) bias

        if not has_proj:
            y = y + xc                                      # identity shortcut
        o_ref[...] = jnp.maximum(y, 0.0)

    return kernel


# ---------------------------------------------------------------------------
# Host-side prep
# ---------------------------------------------------------------------------
def _fold_bn(bn):
    """Fold eval-mode BatchNorm1d (gamma, beta, running_mean, running_var)."""
    gamma, beta, mean, var = (jnp.asarray(t, jnp.float32) for t in bn)
    s = gamma / jnp.sqrt(var + EPS)
    return s, beta - mean * s


def _prepare_weights(params, has_proj, use_scratch, cin, cout, cin_p, cout_p, cdt):
    """Fold eval-mode BN into conv weights / per-channel biases, pad + cast.
    TODO(synk): cache this per (params, config) when chaining many blocks."""
    s1, b1 = _fold_bn(params["bn1"])
    s2, b2 = _fold_bn(params["bn2"])
    w1 = jnp.asarray(params["w1"], jnp.float32) * s1[:, None, None]   # (cout,cin,3)
    w2 = jnp.asarray(params["w2"], jnp.float32) * s2[:, None, None]   # (cout,cout,3)
    ws = None
    if has_proj:
        ss, bs = _fold_bn(params["bns"])
        ws = jnp.asarray(params["ws"], jnp.float32)[:, :, 0] * ss[:, None]
        ws = jnp.pad(ws, ((0, cout_p - cout), (0, cin_p - cin)))      # (cout_p,cin_p)
        b2 = b2 + bs                                     # fold shortcut-BN bias
    b1 = jnp.pad(b1, (0, cout_p - cout)).reshape(cout_p, 1)
    b2 = jnp.pad(b2, (0, cout_p - cout)).reshape(cout_p, 1)

    bias_spec = pl.BlockSpec((cout_p, 1), lambda i: (0, 0))
    if use_scratch:
        # (cout_p, 3*cin_p): columns ordered [left | centre | right] taps.
        w1k = jnp.pad(w1.transpose(0, 2, 1),
                      ((0, cout_p - cout), (0, 0), (0, cin_p - cin)))
        w1k = w1k.reshape(cout_p, 3 * cin_p)
        w2k = jnp.pad(w2.transpose(0, 2, 1),
                      ((0, cout_p - cout), (0, 0), (0, cout_p - cout)))
        w2k = w2k.reshape(cout_p, 3 * cout_p)
        if has_proj:                                     # fuse 1x1 proj into conv2
            w2k = jnp.concatenate([w2k, ws], axis=1)
        weights = [w1k.astype(cdt), b1, w2k.astype(cdt), b2]
        specs = [pl.BlockSpec(w1k.shape, lambda i: (0, 0)), bias_spec,
                 pl.BlockSpec(w2k.shape, lambda i: (0, 0)), bias_spec]
    else:
        # (3, cout_p, cin_p): tap-major so the kernel slices taps on the cheap
        # leading axis (no mid-lane weight slicing).
        w1k = jnp.pad(w1.transpose(2, 0, 1),
                      ((0, 0), (0, cout_p - cout), (0, cin_p - cin)))
        w2k = jnp.pad(w2.transpose(2, 0, 1),
                      ((0, 0), (0, cout_p - cout), (0, cout_p - cout)))
        weights = [w1k.astype(cdt), b1, w2k.astype(cdt), b2]
        specs = [pl.BlockSpec(w1k.shape, lambda i: (0, 0, 0)), bias_spec,
                 pl.BlockSpec(w2k.shape, lambda i: (0, 0, 0)), bias_spec]
        if has_proj:
            weights.append(ws.astype(cdt))
            specs.append(pl.BlockSpec((cout_p, cin_p), lambda i: (0, 0)))
    return weights, specs


def _pick_tiles(n, lout, cin_p, cout_p, n_phases, has_proj, use_scratch,
                cdt_size, max_lanes_override=None):
    """Choose (batch_tile tb, padded segment length lseg, padded batch n_pad) so
    each grid step processes a lane-dense (C, tb*lseg) slab sized for the chip."""
    cap = _vmem_capacity_bytes()
    # Slab budget well under the scoped limit: ~14 MiB on v7x (64 MiB VMEM/TC),
    # ~22 MiB on v5e/v6e (128 MiB VMEM/TC).
    budget = (14 << 20) if cap <= (64 << 20) else (22 << 20)
    per_lane = (4 * n_phases * cin_p * 2            # x-phase blocks, 2 pipeline bufs
                + 4 * cout_p * 2                    # output block, 2 pipeline bufs
                + 4 * (4 * cout_p + 2 * cin_p))     # live f32 temporaries
    if use_scratch:
        per_lane += cdt_size * (3 * cin_p + 3 * cout_p + (cin_p if has_proj else 0))
    max_lanes = min(32768, max(256, (budget // per_lane) // 128 * 128))
    if max_lanes_override is not None:
        max_lanes = max_lanes_override

    unit = 128 // math.gcd(lout, 128)               # smallest tb with tb*lout % 128 == 0
    if unit * lout <= max_lanes:
        lseg, tb = lout, unit
        while tb < n and (tb * 2) * lout <= max_lanes:
            tb *= 2
    else:
        # Long-sequence fallback: pad each batch segment to a lane-aligned length
        # so blocks stay lane-dense and (8,128)-divisible even at tb == 1.
        # TODO(synk): true length-axis tiling (2nd grid dim + 1-lane halo) for
        # sequences whose single padded segment exceeds the VMEM budget.
        lseg = _round_up(lout, 128)
        tb = max(1, max_lanes // lseg)

    n_pad = _round_up(n, tb)
    # Keep >= 2 grid steps when possible so ("parallel",) can shard the batch-block
    # axis across the two TensorCores of a v7x chip (harmless on 1-TC v5e/v6e).
    while n_pad // tb == 1:
        if lseg == lout and tb >= 2 * unit:
            tb //= 2
        elif lseg != lout and tb >= 2:
            tb //= 2
        else:
            break
        n_pad = _round_up(n, tb)
    return tb, lseg, n_pad


def residual_block(x, params, stride=1, compute_dtype=jnp.bfloat16,
                   fuse_taps=None, _max_lanes=None):
    """Pallas ResidualBlock forward.  x: (N, C_in, L) f32 -> (N, C_out, L_out).

    compute_dtype: MXU operand dtype (f32 accumulation always). bf16 (default)
      gives ~2x MXU throughput on v6e/v7x; use jnp.float32 for bit-tight checks.
    fuse_taps: None = auto (fused single-matmul taps via a VMEM RHS scratch only
      for large C; per-tap MXU accumulation otherwise). True/False forces a path.
    """
    n, cin, l = x.shape
    cout = params["w1"].shape[0]
    lout = (l - 1) // stride + 1                            # k=3, pad=1
    has_proj = (stride != 1) or (cin != cout)
    cdt = jnp.dtype(compute_dtype)
    # bf16 packs 2 rows/sublane: pad channels to 16 (not 8) so tap offsets in the
    # RHS scratch (0, C, 2C, ...) stay aligned to the packed (16,128) tile.
    align = 16 if cdt.itemsize == 2 else 8
    cin_p, cout_p = _round_up(cin, align), _round_up(cout, align)
    use_scratch = (min(cin_p, cout_p) >= 128) if fuse_taps is None else bool(fuse_taps)

    # TODO(synk): training-mode BatchNorm (batch statistics + running-stat update).
    weights, w_specs = _prepare_weights(params, has_proj, use_scratch,
                                        cin, cout, cin_p, cout_p, cdt)

    # ---- inputs: dense phase split for stride > 1 (no strided lane loads) ------
    xf = jnp.asarray(x, jnp.float32)
    if stride == 1:
        phases = [xf]                                       # x[j]
    else:
        phases = [xf[:, :, 0::stride],                      # x[s*j]       (centre)
                  xf[:, :, stride - 1::stride],             # x[s*j + s-1] (left, +1 roll)
                  xf[:, :, 1::stride]]                      # x[s*j + 1]   (right)

    tb, lseg, n_pad = _pick_tiles(n, lout, cin_p, cout_p, len(phases), has_proj,
                                  use_scratch, cdt.itemsize, _max_lanes)
    tbl = tb * lseg

    # TODO(synk): slab-in/slab-out variant that keeps the channels-major (C, N*L)
    # layout across chained residual blocks (drops the HBM transpose per block).
    def prep(v):                        # (n, cin, <=lout) -> (cin_p, n_pad*lseg)
        v = jnp.pad(v, ((0, n_pad - n), (0, cin_p - cin), (0, lseg - v.shape[-1])))
        return jnp.transpose(v, (1, 0, 2)).reshape(cin_p, n_pad * lseg)

    inputs = [prep(p) for p in phases]

    # Grid-invariant halo masks, hoisted out of the kernel body.
    pos = jnp.arange(tbl, dtype=jnp.int32) % lseg
    m_prev = (pos != 0).astype(jnp.float32).reshape(1, tbl)
    m_next = (pos != lout - 1).astype(jnp.float32).reshape(1, tbl)

    # NOTE(v5e): if the per-step DMA is exposed, pipeline_mode=pl.Buffered(3) on
    # x_spec deepens input buffering at a small VMEM cost.
    x_spec = pl.BlockSpec((cin_p, tbl), lambda i: (0, i))
    mask_spec = pl.BlockSpec((1, tbl), lambda i: (0, 0))
    in_specs = [x_spec] * len(phases) + [mask_spec, mask_spec] + w_specs

    scratch_shapes = []
    if use_scratch:
        scratch_shapes = [
            pltpu.VMEM((3 * cin_p, tbl), cdt),
            pltpu.VMEM((3 * cout_p + (cin_p if has_proj else 0), tbl), cdt)]

    cap = _vmem_capacity_bytes()
    kernel = _make_kernel(stride, has_proj, use_scratch, cin_p, cout_p, cdt)
    out_cm = pl.pallas_call(
        kernel,
        # NOTE(v7x): bf16 output halves writeback if the consumer accepts it.
        out_shape=jax.ShapeDtypeStruct((cout_p, n_pad * lseg), jnp.float32),
        grid=(n_pad // tb,),
        in_specs=in_specs,
        out_specs=pl.BlockSpec((cout_p, tbl), lambda i: (0, i)),
        scratch_shapes=scratch_shapes,
        compiler_params=pltpu.CompilerParams(
            dimension_semantics=("parallel",),              # batch-block axis
            vmem_limit_bytes=int(min(cap * 3 // 4, 100 << 20)),
        ),
    )(*inputs, m_prev, m_next, *weights)

    out = out_cm.reshape(cout_p, n_pad, lseg).transpose(1, 0, 2)
    return out[:n, :cout, :lout]


# ---------------------------------------------------------------------------
# Pure-JAX reference (correctness check only)
# ---------------------------------------------------------------------------
def residual_block_ref(x, params, stride=1):
    def conv1d(v, w, s, p):
        return jax.lax.conv_general_dilated(
            v, w, window_strides=(s,), padding=[(p, p)],
            dimension_numbers=("NCH", "OIH", "NCH"),
            precision=jax.lax.Precision.HIGHEST)

    def bn(v, bnp):
        gamma, beta, mean, var = bnp
        return ((v - mean[None, :, None]) / jnp.sqrt(var[None, :, None] + EPS)
                * gamma[None, :, None] + beta[None, :, None])

    cin = x.shape[1]
    cout = params["w1"].shape[0]
    out = conv1d(x, params["w1"], stride, 1)
    out = jax.nn.relu(bn(out, params["bn1"]))
    out = bn(conv1d(out, params["w2"], 1, 1), params["bn2"])
    if stride != 1 or cin != cout:
        sc = bn(conv1d(x, params["ws"], stride, 0), params["bns"])
    else:
        sc = x
    return jax.nn.relu(out + sc)


def init_params(key, cin, cout, stride=1):
    ks = jax.random.split(key, 6)

    def bn_init(k):
        k1, k2, k3, k4 = jax.random.split(k, 4)
        gamma = 1.0 + 0.1 * jax.random.normal(k1, (cout,), jnp.float32)
        beta = 0.1 * jax.random.normal(k2, (cout,), jnp.float32)
        mean = 0.1 * jax.random.normal(k3, (cout,), jnp.float32)
        var = jax.random.uniform(k4, (cout,), jnp.float32, 0.5, 1.5)
        return (gamma, beta, mean, var)

    params = {
        "w1": 0.2 * jax.random.normal(ks[0], (cout, cin, 3), jnp.float32),
        "bn1": bn_init(ks[1]),
        "w2": 0.2 * jax.random.normal(ks[2], (cout, cout, 3), jnp.float32),
        "bn2": bn_init(ks[3]),
    }
    if stride != 1 or cin != cout:
        params["ws"] = 0.2 * jax.random.normal(ks[4], (cout, cin, 1), jnp.float32)
        params["bns"] = bn_init(ks[5])
    return params


if __name__ == "__main__":
    key = jax.random.PRNGKey(0)
    kx, kp1, kp2, kp3, kp4, kx2 = jax.random.split(key, 6)
    N, Cin, Cout, L = 2, 4, 8, 16
    x = jax.random.normal(kx, (N, Cin, L), jnp.float32)
    f32 = jnp.float32
    checks = []

    # 1) Projection shortcut (cin != cout), stride 1, per-tap MXU path (auto).
    p1 = init_params(kp1, Cin, Cout, stride=1)
    r1 = residual_block_ref(x, p1, stride=1)
    y1 = residual_block(x, p1, stride=1, compute_dtype=f32)
    checks.append(("proj/per-tap", y1, r1, 1e-3))

    # 2) Same block, fused-tap scratch path (1x1 proj fused into the conv2 matmul).
    y1f = residual_block(x, p1, stride=1, compute_dtype=f32, fuse_taps=True)
    checks.append(("proj/fused-scratch", y1f, r1, 1e-3))

    # 3) Identity shortcut (cin == cout, stride == 1), chained off case 1.
    p2 = init_params(kp2, Cout, Cout, stride=1)
    r2 = residual_block_ref(y1, p2, stride=1)
    y2 = residual_block(y1, p2, stride=1, compute_dtype=f32)
    checks.append(("identity", y2, r2, 1e-3))

    # 4) Stride-2 downsampling (projection shortcut forced by stride).
    p3 = init_params(kp3, Cout, Cout, stride=2)
    r3 = residual_block_ref(y2, p3, stride=2)
    y3 = residual_block(y2, p3, stride=2, compute_dtype=f32)
    checks.append(("stride2", y3, r3, 1e-3))

    # 5) Default bf16 MXU operands (f32 accumulation) — loose tolerance.
    y1b = residual_block(x, p1, stride=1)
    checks.append(("proj/bf16", y1b, r1, 1e-1))

    # 6) Odd-length / long-sequence fallback: lane-padded segments (tb=1 path).
    x2 = jax.random.normal(kx2, (N, Cout, 10), jnp.float32)
    p4 = init_params(kp4, Cout, Cout, stride=1)
    r4 = residual_block_ref(x2, p4, stride=1)
    y4 = residual_block(x2, p4, stride=1, compute_dtype=f32, _max_lanes=128)
    checks.append(("padded-segment", y4, r4, 1e-3))

    jax.block_until_ready([c[1] for c in checks])
    assert y1.shape == (N, Cout, L)
    assert y2.shape == (N, Cout, L)
    assert y3.shape == (N, Cout, L // 2)
    assert y4.shape == (N, Cout, 10)
    for name, got, want, tol in checks:
        assert got.shape == want.shape, f"shape mismatch ({name})"
        assert jnp.allclose(got, want, atol=tol, rtol=tol), f"mismatch vs reference ({name})"
    print("KERNEL_OK")
</pallas_src>

<mosaic_0001>
module attributes {stable_mosaic.version = 11 : i64} {
  func.func @kernel(%arg0: i32, %arg1: memref<8x128xf32, #tpu.memory_space<vmem>>, %arg2: memref<1x128xf32, #tpu.memory_space<vmem>>, %arg3: memref<1x128xf32, #tpu.memory_space<vmem>>, %arg4: memref<3x8x8xf32, #tpu.memory_space<vmem>>, %arg5: memref<8x1xf32, #tpu.memory_space<vmem>>, %arg6: memref<3x8x8xf32, #tpu.memory_space<vmem>>, %arg7: memref<8x1xf32, #tpu.memory_space<vmem>>, %arg8: memref<8x8xf32, #tpu.memory_space<vmem>>, %arg9: memref<8x128xf32, #tpu.memory_space<vmem>>) attributes {dimension_semantics = [#tpu.dimension_semantics<parallel>], iteration_bounds = array<i64: 1>, scalar_prefetch = 0 : i64, scratch_operands = 0 : i64, tpu.core_type = #tpu.core_type<tc>, window_params = [{transform_indices = @transform_0, window_bounds = array<i64: 8, 128>}, {pipeline_mode = #tpu.pipeline_mode<synchronous>, transform_indices = @transform_1, window_bounds = array<i64: 1, 128>}, {pipeline_mode = #tpu.pipeline_mode<synchronous>, transform_indices = @transform_2, window_bounds = array<i64: 1, 128>}, {pipeline_mode = #tpu.pipeline_mode<synchronous>, transform_indices = @transform_3, window_bounds = array<i64: 3, 8, 8>}, {pipeline_mode = #tpu.pipeline_mode<synchronous>, transform_indices = @transform_4, window_bounds = array<i64: 8, 1>}, {pipeline_mode = #tpu.pipeline_mode<synchronous>, transform_indices = @transform_5, window_bounds = array<i64: 3, 8, 8>}, {pipeline_mode = #tpu.pipeline_mode<synchronous>, transform_indices = @transform_6, window_bounds = array<i64: 8, 1>}, {pipeline_mode = #tpu.pipeline_mode<synchronous>, transform_indices = @transform_7, window_bounds = array<i64: 8, 8>}, {transform_indices = @transform_8, window_bounds = array<i64: 8, 128>}]} {
    %c0 = arith.constant 0 : index
    %c0_0 = arith.constant 0 : index
    %0 = vector.load %arg2[%c0, %c0_0] : memref<1x128xf32, #tpu.memory_space<vmem>>, vector<1x128xf32>
    %c0_1 = arith.constant 0 : index
    %c0_2 = arith.constant 0 : index
    %1 = vector.load %arg3[%c0_1, %c0_2] : memref<1x128xf32, #tpu.memory_space<vmem>>, vector<1x128xf32>
    %c0_3 = arith.constant 0 : index
    %c0_4 = arith.constant 0 : index
    %2 = vector.load %arg1[%c0_3, %c0_4] : memref<8x128xf32, #tpu.memory_space<vmem>>, vector<8x128xf32>
    %c1_i32 = arith.constant 1 : i32
    %3 = tpu.dynamic_rotate %2 by %c1_i32 dim 1 : vector<8x128xf32>, i32 -> vector<8x128xf32>
    %4 = vector.broadcast %0 : vector<1x128xf32> to vector<8x128xf32>
    %5 = arith.mulf %4, %3 : vector<8x128xf32>
    %c127_i32 = arith.constant 127 : i32
    %6 = tpu.dynamic_rotate %2 by %c127_i32 dim 1 : vector<8x128xf32>, i32 -> vector<8x128xf32>
    %7 = vector.broadcast %1 : vector<1x128xf32> to vector<8x128xf32>
    %8 = arith.mulf %7, %6 : vector<8x128xf32>
    %c0_5 = arith.constant 0 : index
    %c0_6 = arith.constant 0 : index
    %c0_7 = arith.constant 0 : index
    %9 = vector.load %arg4[%c0_5, %c0_6, %c0_7] : memref<3x8x8xf32, #tpu.memory_space<vmem>>, vector<1x8x8xf32>
    %10 = vector.shape_cast %9 : vector<1x8x8xf32> to vector<8x8xf32>
    %cst = arith.constant dense<0.000000e+00> : vector<8x128xf32>
    %11 = tpu.matmul %10, %5, %cst {dimension_numbers = #tpu.dot_dimension_numbers<[1], [0], [0], [1], [0, 0, 1, 1], [], []>} : vector<8x8xf32>, vector<8x128xf32>, vector<8x128xf32> -> vector<8x128xf32>
    %c1 = arith.constant 1 : index
    %c0_8 = arith.constant 0 : index
    %c0_9 = arith.constant 0 : index
    %12 = vector.load %arg4[%c1, %c0_8, %c0_9] : memref<3x8x8xf32, #tpu.memory_space<vmem>>, vector<1x8x8xf32>
    %13 = vector.shape_cast %12 : vector<1x8x8xf32> to vector<8x8xf32>
    %cst_10 = arith.constant dense<0.000000e+00> : vector<8x128xf32>
    %14 = tpu.matmul %13, %2, %cst_10 {dimension_numbers = #tpu.dot_dimension_numbers<[1], [0], [0], [1], [0, 0, 1, 1], [], []>} : vector<8x8xf32>, vector<8x128xf32>, vector<8x128xf32> -> vector<8x128xf32>
    %15 = arith.addf %11, %14 : vector<8x128xf32>
    %c2 = arith.constant 2 : index
    %c0_11 = arith.constant 0 : index
    %c0_12 = arith.constant 0 : index
    %16 = vector.load %arg4[%c2, %c0_11, %c0_12] : memref<3x8x8xf32, #tpu.memory_space<vmem>>, vector<1x8x8xf32>
    %17 = vector.shape_cast %16 : vector<1x8x8xf32> to vector<8x8xf32>
    %cst_13 = arith.constant dense<0.000000e+00> : vector<8x128xf32>
    %18 = tpu.matmul %17, %8, %cst_13 {dimension_numbers = #tpu.dot_dimension_numbers<[1], [0], [0], [1], [0, 0, 1, 1], [], []>} : vector<8x8xf32>, vector<8x128xf32>, vector<8x128xf32> -> vector<8x128xf32>
    %19 = arith.addf %15, %18 : vector<8x128xf32>
    %c0_14 = arith.constant 0 : index
    %c0_15 = arith.constant 0 : index
    %20 = vector.load %arg5[%c0_14, %c0_15] : memref<8x1xf32, #tpu.memory_space<vmem>>, vector<8x1xf32>
    %21 = vector.broadcast %20 : vector<8x1xf32> to vector<8x128xf32>
    %22 = arith.addf %19, %21 : vector<8x128xf32>
    %cst_16 = arith.constant 0.000000e+00 : f32
    %23 = vector.broadcast %cst_16 : f32 to vector<8x128xf32>
    %24 = arith.maximumf %22, %23 : vector<8x128xf32>
    %c1_i32_17 = arith.constant 1 : i32
    %25 = tpu.dynamic_rotate %24 by %c1_i32_17 dim 1 : vector<8x128xf32>, i32 -> vector<8x128xf32>
    %26 = vector.broadcast %0 : vector<1x128xf32> to vector<8x128xf32>
    %27 = arith.mulf %26, %25 : vector<8x128xf32>
    %c127_i32_18 = arith.constant 127 : i32
    %28 = tpu.dynamic_rotate %24 by %c127_i32_18 dim 1 : vector<8x128xf32>, i32 -> vector<8x128xf32>
    %29 = vector.broadcast %1 : vector<1x128xf32> to vector<8x128xf32>
    %30 = arith.mulf %29, %28 : vector<8x128xf32>
    %c0_19 = arith.constant 0 : index
    %c0_20 = arith.constant 0 : index
    %c0_21 = arith.constant 0 : index
    %31 = vector.load %arg6[%c0_19, %c0_20, %c0_21] : memref<3x8x8xf32, #tpu.memory_space<vmem>>, vector<1x8x8xf32>
    %32 = vector.shape_cast %31 : vector<1x8x8xf32> to vector<8x8xf32>
    %cst_22 = arith.constant dense<0.000000e+00> : vector<8x128xf32>
    %33 = tpu.matmul %32, %27, %cst_22 {dimension_numbers = #tpu.dot_dimension_numbers<[1], [0], [0], [1], [0, 0, 1, 1], [], []>} : vector<8x8xf32>, vector<8x128xf32>, vector<8x128xf32> -> vector<8x128xf32>
    %c1_23 = arith.constant 1 : index
    %c0_24 = arith.constant 0 : index
    %c0_25 = arith.constant 0 : index
    %34 = vector.load %arg6[%c1_23, %c0_24, %c0_25] : memref<3x8x8xf32, #tpu.memory_space<vmem>>, vector<1x8x8xf32>
    %35 = vector.shape_cast %34 : vector<1x8x8xf32> to vector<8x8xf32>
    %cst_26 = arith.constant dense<0.000000e+00> : vector<8x128xf32>
    %36 = tpu.matmul %35, %24, %cst_26 {dimension_numbers = #tpu.dot_dimension_numbers<[1], [0], [0], [1], [0, 0, 1, 1], [], []>} : vector<8x8xf32>, vector<8x128xf32>, vector<8x128xf32> -> vector<8x128xf32>
    %37 = arith.addf %33, %36 : vector<8x128xf32>
    %c2_27 = arith.constant 2 : index
    %c0_28 = arith.constant 0 : index
    %c0_29 = arith.constant 0 : index
    %38 = vector.load %arg6[%c2_27, %c0_28, %c0_29] : memref<3x8x8xf32, #tpu.memory_space<vmem>>, vector<1x8x8xf32>
    %39 = vector.shape_cast %38 : vector<1x8x8xf32> to vector<8x8xf32>
    %cst_30 = arith.constant dense<0.000000e+00> : vector<8x128xf32>
    %40 = tpu.matmul %39, %30, %cst_30 {dimension_numbers = #tpu.dot_dimension_numbers<[1], [0], [0], [1], [0, 0, 1, 1], [], []>} : vector<8x8xf32>, vector<8x128xf32>, vector<8x128xf32> -> vector<8x128xf32>
    %41 = arith.addf %37, %40 : vector<8x128xf32>
    %c0_31 = arith.constant 0 : index
    %c0_32 = arith.constant 0 : index
    %42 = vector.load %arg8[%c0_31, %c0_32] : memref<8x8xf32, #tpu.memory_space<vmem>>, vector<8x8xf32>
    %cst_33 = arith.constant dense<0.000000e+00> : vector<8x128xf32>
    %43 = tpu.matmul %42, %2, %cst_33 {dimension_numbers = #tpu.dot_dimension_numbers<[1], [0], [0], [1], [0, 0, 1, 1], [], []>} : vector<8x8xf32>, vector<8x128xf32>, vector<8x128xf32> -> vector<8x128xf32>
    %44 = arith.addf %41, %43 : vector<8x128xf32>
    %c0_34 = arith.constant 0 : index
    %c0_35 = arith.constant 0 : index
    %45 = vector.load %arg7[%c0_34, %c0_35] : memref<8x1xf32, #tpu.memory_space<vmem>>, vector<8x1xf32>
    %46 = vector.broadcast %45 : vector<8x1xf32> to vector<8x128xf32>
    %47 = arith.addf %44, %46 : vector<8x128xf32>
    %cst_36 = arith.constant 0.000000e+00 : f32
    %48 = vector.broadcast %cst_36 : f32 to vector<8x128xf32>
    %49 = arith.maximumf %47, %48 : vector<8x128xf32>
    %c0_37 = arith.constant 0 : index
    %c0_38 = arith.constant 0 : index
    %50 = vector.load %arg9[%c0_37, %c0_38] : memref<8x128xf32, #tpu.memory_space<vmem>>, vector<8x128xf32>
    tpu.vector_store %arg9[%c0_37, %c0_38], %49 {strides = array<i32>} : memref<8x128xf32, #tpu.memory_space<vmem>>, vector<8x128xf32>,
    return
  }
  func.func @transform_0(%arg0: i32) -> (i32, i32) {
    %c0_i32 = arith.constant 0 : i32
    %c0_i32_0 = arith.constant 0 : i32
    return %c0_i32, %arg0 : i32, i32
  }
  func.func @transform_1(%arg0: i32) -> (i32, i32) {
    %c0_i32 = arith.constant 0 : i32
    %c0_i32_0 = arith.constant 0 : i32
    %c0_i32_1 = arith.constant 0 : i32
    return %c0_i32, %c0_i32_0 : i32, i32
  }
  func.func @transform_2(%arg0: i32) -> (i32, i32) {
    %c0_i32 = arith.constant 0 : i32
    %c0_i32_0 = arith.constant 0 : i32
    %c0_i32_1 = arith.constant 0 : i32
    return %c0_i32, %c0_i32_0 : i32, i32
  }
  func.func @transform_3(%arg0: i32) -> (i32, i32, i32) {
    %c0_i32 = arith.constant 0 : i32
    %c0_i32_0 = arith.constant 0 : i32
    %c0_i32_1 = arith.constant 0 : i32
    %c0_i32_2 = arith.constant 0 : i32
    return %c0_i32, %c0_i32_0, %c0_i32_1 : i32, i32, i32
  }
  func.func @transform_4(%arg0: i32) -> (i32, i32) {
    %c0_i32 = arith.constant 0 : i32
    %c0_i32_0 = arith.constant 0 : i32
    %c0_i32_1 = arith.constant 0 : i32
    return %c0_i32, %c0_i32_0 : i32, i32
  }
  func.func @transform_5(%arg0: i32) -> (i32, i32, i32) {
    %c0_i32 = arith.constant 0 : i32
    %c0_i32_0 = arith.constant 0 : i32
    %c0_i32_1 = arith.constant 0 : i32
    %c0_i32_2 = arith.constant 0 : i32
    return %c0_i32, %c0_i32_0, %c0_i32_1 : i32, i32, i32
  }
  func.func @transform_6(%arg0: i32) -> (i32, i32) {
    %c0_i32 = arith.constant 0 : i32
    %c0_i32_0 = arith.constant 0 : i32
    %c0_i32_1 = arith.constant 0 : i32
    return %c0_i32, %c0_i32_0 : i32, i32
  }
  func.func @transform_7(%arg0: i32) -> (i32, i32) {
    %c0_i32 = arith.constant 0 : i32
    %c0_i32_0 = arith.constant 0 : i32
    %c0_i32_1 = arith.constant 0 : i32
    return %c0_i32, %c0_i32_0 : i32, i32
  }
  func.func @transform_8(%arg0: i32) -> (i32, i32) {
    %c0_i32 = arith.constant 0 : i32
    %c0_i32_0 = arith.constant 0 : i32
    return %c0_i32, %arg0 : i32, i32
  }
}

</mosaic_0001>

<bundles_post_ra>
// kernel: tpu_custom_call.1
= control target key start
LH: loop header
LB: loop body
LE: loop exit
PB: predicated region body
PF: predicated region fallthrough
CT: control target
= control target key end

     0   :  { %13 = vsyncpa [#allocation3], 0  ;;  %s933_s0 = inlined_call_operand.hbm [shape: f32[8,128], index: 0, kind: input, shape index: {}]   ;;  %s934_s1 = inlined_call_operand.vmem [shape: f32[1,128], index: 1, kind: input, shape index: {}]   ;;  %s935_s2 = inlined_call_operand.vmem [shape: f32[1,128], index: 2, kind: input, shape index: {}]   ;;  %s936_s3 = inlined_call_operand.hbm [shape: f32[3,8,8], index: 3, kind: input, shape index: {}]   ;;  %s937_s4 = inlined_call_operand.vmem [shape: f32[8,1], index: 4, kind: input, shape index: {}]   ;;  %s938_s5 = inlined_call_operand.vmem [shape: f32[3,8,8], index: 5, kind: input, shape index: {}]   ;;  %s939_s6 = inlined_call_operand.vmem [shape: f32[8,1], index: 6, kind: input, shape index: {}]   ;;  %s940_s7 = inlined_call_operand.hbm [shape: f32[8,8], index: 7, kind: input, shape index: {}]   ;;  %s941_s8 = inlined_call_operand.hbm [shape: f32[8,128], index: 8, kind: output, shape index: {}]  }
   0x1   :  { %14 = vsyncpa [#allocation6], 0 }
   0x2   :  { %15 = vsyncpa [#allocation4], 0  ;;  %s812_s27 = smov [#allocation5]  }
   0x3   :  { %s35_s28 = sshll.u32 %s812_s27, 4  ;;  %s36_s28 = int_to_ptr.vmem [resolvable:$true] %s35_s28 }
   0x4   :  { %s734_s29 = scalar_lea.vmem %s36_s28, 384  ;;  %p739_p1 = scmp.lt.s32.totalorder %s36_s28, %s36_s28 }
   0x5   :  { %p735_p0 = scmp.ne.s32.totalorder %s36_s28, %s734_s29  ;;  %p740_p2 = scmp.lt.s32.totalorder %s734_s29, %s734_s29 }
   0x7   :  { %p741_p3 = por %p740_p2, %p739_p1 }
   0x9   :  { %p742_p4 = pnand %p741_p3, %p735_p0 }
   0xb   :  { %745 = shalt.err (!%p742_p4)
}
   0xc   :  { %s813_s30 = smov 128   ;;  %s814_s9 = smov 8  }
   0xd   :  { %41 = dma.hbm_to_vmem [thread:$0]  %s936_s3, 384, %s36_s28, [#allocation6], %s813_s30, %s813_s30, %s814_s9  }
   0xe   :  { %s815_s12 = smov [#allocation2]   ;;  %s816_s14 = smov [#allocation7]  }
   0xf   :  { %s22_s13 = sshll.u32 %s815_s12, 4  ;;  %s54_s15 = sshll.u32 %s816_s14, 4  ;;  %s23_s13 = int_to_ptr.vmem [resolvable:$true] %s22_s13  ;;  %s55_s15 = int_to_ptr.vmem [resolvable:$true] %s54_s15 }
  0x10   :  { %s754_s16 = scalar_lea.vmem %s23_s13, 128  ;;  %p759_p6 = scmp.lt.s32.totalorder %s23_s13, %s23_s13 }
  0x11   :  { %p755_p5 = scmp.ne.s32.totalorder %s23_s13, %s754_s16  ;;  %p760_p7 = scmp.lt.s32.totalorder %s754_s16, %s754_s16 }
  0x13   :  { %p761_p8 = por %p760_p7, %p759_p6 }
  0x15   :  { %p762_p9 = pnand %p761_p8, %p755_p5 }
  0x17   :  { %765 = shalt.err (!%p762_p9)
}
  0x18   :  { %25 = dma.hbm_to_vmem [thread:$0]  %s933_s0, 128, %s23_s13, [#allocation3]  }
  0x19   :  { %s774_s19 = scalar_lea.vmem %s55_s15, 128  ;;  %p779_p11 = scmp.lt.s32.totalorder %s55_s15, %s55_s15 }
  0x1a   :  { %p775_p10 = scmp.ne.s32.totalorder %s55_s15, %s774_s19  ;;  %p780_p12 = scmp.lt.s32.totalorder %s774_s19, %s774_s19 }
  0x1c   :  { %p781_p13 = por %p780_p12, %p779_p11 }
  0x1e   :  { %p782_p0 = pnand %p781_p13, %p775_p10 }
  0x20   :  { %785 = shalt.err (!%p782_p0)
}
  0x21   :  { %57 = dma.hbm_to_vmem [thread:$0]  %s940_s7, 128, %s55_s15, [#allocation6]  }
  0x22   :  { %806 = dma.done.wait [#allocation3], 128  }
  0x23   :  { %807 = vsyncadd [#allocation3], 4294967168 }
  0x24   :  { %808 = dma.done.wait [#allocation6], 512  }
  0x25   :  { %809 = vsyncadd [#allocation6], 4294966784  ;;  %v817_v0 = vmov 0.0   ;;  %vm818_vm0 = vmmov 0   ;;  %v819_v1 = vmov 0   ;;  %vm91_vm1 = vcmask 64512  }
  0x26   :  { %678 = vmatprep.subr.mxu0 %v817_v0  ;;  %680 = vmatprep.mubr.msk.f32.mxu0 %vm818_vm0, %v817_v0  ;;  %v69_v2 = vld [vmem:[#allocation2] sm:$0xff]  ;;  %v90_v3 = vld [vmem:[#allocation5 + $0x8] sm:$0xff]  ;;  %s820_s0 = smov 1   ;;  %s821_s22 = smov 127   ;;  %v88_v8 = vld [vmem:[#allocation5] sm:$0xff] }
  0x27   :  { %683 = vmatprep.subr.mxu1 %v817_v0  ;;  %685 = vmatprep.mubr.msk.f32.mxu1 %vm818_vm0, %v817_v0  ;;  %v314_v4 = vld [vmem:[%s937_s4] sm:$0xff]  ;;  %v239_v12 = vld [vmem:[#allocation5 + $0x10] sm:$0xff]  ;;  %v658_v24 = vld [vmem:[%s938_s5 + $0x8] sm:$0xff] }
  0x28   :  { %724 = vset.pattern.permute.xlu1 %v819_v1  ;;  %725 = vset.pattern.permute.xlu0 %v819_v1  ;;  %v653_v5 = vld [vmem:[%s934_s1] ss:$0 sm:$0xff]  ;;  %v661_v31 = vld [vmem:[%s938_s5 + $0x10] sm:$0xff] }
  0x29   :  { %70 = vrot.lane.b32.xlu0 %v69_v2, %s820_s0  ;;  %679 = vmatpush3.msra.mxu0 %v69_v2  ;;  %v654_v9 = vld [vmem:[%s935_s2] ss:$0 sm:$0xff] }
  0x2a   :  { %681 = vmatmul.mubr.msk.f32.vlgmr.msra.gmra.mxu0 %vm91_vm1, %v90_v3  ;;  %688 = vmatprep.subr.mxu0 %v817_v0  ;;  %v628_v25 = vld [vmem:[%s939_s6] sm:$0xff] }
  0x2b   :  { %690 = vmatprep.mubr.msk.f32.mxu0 %vm818_vm0, %v817_v0  ;;  %317 = vperm.xlu1 %724, %v314_v4   ;;  %v328_v30 = vld [vmem:[%s938_s5] sm:$0xff]  ;;  %s822_s5 = smov [#allocation8]  }
  0x2c   :  { %v553_v32 = vld [vmem:[#allocation7] sm:$0xff]  ;;  %s643_s6 = sshll.u32 %s822_s5, 4  ;;  %s644_s6 = int_to_ptr.vmem [resolvable:$true] %s643_s6 }
  0x2d   :  { %79 = vrot.lane.b32.xlu0 %v69_v2, %s821_s22  ;;  %s786_s10 = scalar_lea.vmem %s644_s6, 128  ;;  %p791_p2 = scmp.lt.s32.totalorder %s644_s6, %s644_s6 }
  0x2e   :  { %p787_p1 = scmp.ne.s32.totalorder %s644_s6, %s786_s10  ;;  %p792_p3 = scmp.lt.s32.totalorder %s786_s10, %s786_s10 }
  0x30   :  { %p793_p4 = por %p792_p3, %p791_p2 }
  0x32   :  { %p794_p5 = pnand %p793_p4, %p787_p1 }
  0x9b   :  { %v71_v6 = vpop.permute.xlu0 %70 }
  0x9c   :  { %v78_v7 = vmul.f32 %v653_v5, %v71_v6 }
  0x9e   :  { %684 = vmatpush3.msra.mxu1 %v78_v7 }
  0x9f   :  { %v80_v10 = vpop.permute.xlu0 %79  ;;  %686 = vmatmul.mubr.msk.f32.vlgmr.msra.gmra.mxu1 %vm91_vm1, %v88_v8  ;;  %693 = vmatprep.subr.mxu1 %v817_v0 }
  0xa0   :  { %v87_v11 = vmul.f32 %v654_v9, %v80_v10  ;;  %695 = vmatprep.mubr.msk.f32.mxu1 %vm818_vm0, %v817_v0 }
  0xa2   :  { %689 = vmatpush3.msra.mxu0 %v87_v11 }
  0xa3   :  { %691 = vmatmul.mubr.msk.f32.vlgmr.msra.gmra.mxu0 %vm91_vm1, %v239_v12  ;;  %698 = vmatprep.subr.mxu0 %v817_v0 }
  0xa4   :  { %700 = vmatprep.mubr.msk.f32.mxu0 %vm818_vm0, %v817_v0 }
  0xa6   :  { %v318_v19 = vpop.permute.xlu1 %317 }
  0xea   :  { %v161_v13 = vpop.f32.mrf.mxu0 }
  0xec   :  { %v682_v14 = vpop.f32.mrf.mxu0 }
 0x15f   :  { %v234_v15 = vpop.f32.mrf.mxu1 }
 0x160   :  { %v235_v17 = vadd.f32 %v234_v15, %v161_v13 }
 0x161   :  { %v687_v16 = vpop.f32.mrf.mxu1 }
 0x163   :  { %v309_v18 = vpop.f32.mrf.mxu0 }
 0x164   :  { %v313_v20 = vadd.f32 %v309_v18, %v235_v17 }
 0x165   :  { %v692_v21 = vpop.f32.mrf.mxu0 }
 0x166   :  { %v320_v22 = vadd.f32 %v318_v19, %v313_v20 }
 0x168   :  { %v321_v23 = vmax.f32 %v320_v22, 0.0 }
 0x16a   :  { %325 = vrot.lane.b32.xlu0 %v321_v23, %s821_s22  ;;  %322 = vrot.lane.b32.xlu1 %v321_v23, %s820_s0 }
 0x16b   :  { %694 = vmatpush3.msra.mxu1 %v321_v23 }
 0x16c   :  { %696 = vmatmul.mubr.msk.f32.vlgmr.msra.gmra.mxu1 %vm91_vm1, %v658_v24  ;;  %703 = vmatprep.subr.mxu1 %v817_v0 }
 0x16d   :  { %705 = vmatprep.mubr.msk.f32.mxu1 %vm818_vm0, %v817_v0 }
 0x16e   :  { %631 = vperm.xlu1 %724, %v628_v25  }
 0x1dc   :  { %v326_v26 = vpop.permute.xlu0 %325  ;;  %v323_v27 = vpop.permute.xlu1 %322 }
 0x1dd   :  { %v327_v28 = vmul.f32 %v654_v9, %v326_v26  ;;  %v324_v29 = vmul.f32 %v653_v5, %v323_v27 }
 0x1df   :  { %699 = vmatpush3.msra.mxu0 %v324_v29  ;;  %704 = vmatpush3.msra.mxu1 %v327_v28 }
 0x1e0   :  { %701 = vmatmul.mubr.msk.f32.vlgmr.msra.gmra.mxu0 %vm91_vm1, %v328_v30  ;;  %706 = vmatmul.mubr.msk.f32.vlgmr.msra.gmra.mxu1 %vm91_vm1, %v661_v31 }
 0x1e1   :  { %708 = vmatprep.subr.mxu0 %v817_v0  ;;  %710 = vmatprep.mubr.msk.f32.mxu0 %vm818_vm0, %v817_v0 }
 0x1e2   :  { %709 = vmatpush3.msra.mxu0 %v69_v2 }
 0x1e4   :  { %711 = vmatmul.mubr.msk.f32.vlgmr.msra.gmra.mxu0 %vm91_vm1, %v553_v32 }
 0x1e9   :  { %v632_v43 = vpop.permute.xlu1 %631 }
 0x22c   :  { %v400_v33 = vpop.f32.mrf.mxu1 }
 0x22e   :  { %v697_v34 = vpop.f32.mrf.mxu1 }
 0x2a0   :  { %v473_v35 = vpop.f32.mrf.mxu0  ;;  %v548_v36 = vpop.f32.mrf.mxu1 }
 0x2a1   :  { %v474_v37 = vadd.f32 %v473_v35, %v400_v33 }
 0x2a2   :  { %v702_v38 = vpop.f32.mrf.mxu0  ;;  %v707_v39 = vpop.f32.mrf.mxu1 }
 0x2a3   :  { %v552_v40 = vadd.f32 %v548_v36, %v474_v37 }
 0x2a4   :  { %v623_v41 = vpop.f32.mrf.mxu0 }
 0x2a5   :  { %v627_v42 = vadd.f32 %v623_v41, %v552_v40 }
 0x2a6   :  { %v712_v44 = vpop.f32.mrf.mxu0 }
 0x2a7   :  { %v634_v45 = vadd.f32 %v632_v43, %v627_v42 }
 0x2a9   :  { %v635_v46 = vmax.f32 %v634_v45, 0.0 }
 0x2ab   :  { %636 = vst [vmem:[#allocation8] sm:$0xff] %v635_v46 }
 0x2ac   :  { %797 = shalt.err (!%p794_p5)
}
 0x2ad   :  { %646 = dma.vmem_to_hbm [thread:$0]  %s644_s6, 128, %s941_s8, [#allocation4]  }
 0x2ae   :  { %810 = dma.done.wait [#allocation4], 128  }
 0x2af   :  { %811 = vsyncadd [#allocation4], 4294967168 }
 0x2b0   :  { %650 = vsyncpa [#allocation3], 1 }
 0x2b1   :  { %651 = vsyncpa [#allocation6], 1 }
 0x2b2   :  { %652 = vsyncpa [#allocation4], 1 }

</bundles_post_ra>
